<compile_context>
chip_gen: v6e
topology: v6e:2x2x1
jax: 0.10.0
libtpu: 0.0.40
codegen_flags: <defaults>
</compile_context>

<pallas_src>
import math
import functools

import jax
import jax.numpy as jnp
from jax.experimental import pallas as pl
from jax.experimental.pallas import tpu as pltpu


def get_embedding(num_embeddings: int, embedding_dim: int, padding_idx=None):
    """JAX port of SinusoidalPositionalEmbedding.get_embedding (deterministic)."""
    half_dim = embedding_dim // 2
    denom = max(half_dim - 1, 1)  # deliberate guard: reference divides by zero at D == 2
    emb = math.log(10000) / denom
    emb = jnp.exp(jnp.arange(half_dim, dtype=jnp.float32) * -emb)
    emb = jnp.arange(num_embeddings, dtype=jnp.float32)[:, None] * emb[None, :]
    emb = jnp.concatenate([jnp.sin(emb), jnp.cos(emb)], axis=1)
    if embedding_dim % 2 == 1:
        emb = jnp.concatenate([emb, jnp.zeros((num_embeddings, 1), jnp.float32)],
                              axis=1)
    if padding_idx is not None:
        emb = emb.at[padding_idx].set(0.0)
    return emb.astype(jnp.float32)


def _sinpos_kernel(starts_ref, tokens_ref, slab_ref, out_ref, *,
                   padding_idx: int, left_pad: bool, block_b: int, block_s: int):
    """One grid step handles a (block_b, block_s) tile of (batch, seq).

    Grid is (seq tiles, batch tiles): batch is the innermost axis.

    starts_ref : SMEM (bsz,) int32    per-row window start into `slab` (left_pad)
    tokens_ref : VMEM (TB, TS, 1) int32
    slab_ref   : VMEM (TS, D)          left_pad=False: seq-tiled position window
                 VMEM (2*S, D)         left_pad=True : resident slab (per-row pl.ds)
    out_ref    : VMEM (TB, TS, D)
    """
    if not left_pad:
        # Same window for every batch row: one broadcast multiply, dense store.
        mask = (tokens_ref[...] != padding_idx).astype(out_ref.dtype)   # (TB, TS, 1)
        out_ref[...] = slab_ref[...][None, :, :] * mask
    else:
        s0 = pl.program_id(0) * block_s
        b0 = pl.program_id(1) * block_b

        def body(r, carry):
            start = starts_ref[b0 + r] + s0                         # SMEM scalar read
            win = slab_ref[pl.ds(start, block_s), :]                # (TS, D)
            row_mask = (tokens_ref[r] != padding_idx).astype(out_ref.dtype)  # (TS, 1)
            out_ref[r, :, :] = win * row_mask
            return carry

        # block_b is a static Python int -> full unroll gives the LLO scheduler
        # visibility across the unaligned slab loads.
        jax.lax.fori_loop(0, block_b, body, 0, unroll=True)


def _vmem_budget_bytes():
    cap = 64 << 20                      # conservative default (v7x physical VMEM)
    try:
        info = pltpu.get_tpu_info()
        cap = int(getattr(info, "vmem_capacity_bytes", cap)) or cap
    except Exception:
        pass
    return max(int(cap * 3 // 4), 16 << 20)   # leave headroom for Mosaic internals


def _seq_tile_candidates(seq_len, sub_mult):
    cands = [d for d in range(sub_mult, seq_len, sub_mult) if seq_len % d == 0]
    return cands + [seq_len]            # full extent is always a legal block


def sinusoidal_positional_embedding(tokens, weights, *, padding_idx: int,
                                    left_pad: bool = False,
                                    out_dtype=jnp.float32,
                                    block_b=None, block_s=None):
    """Forward pass (non-incremental path). tokens: [bsz, seq_len] integer ids."""
    tokens = tokens.astype(jnp.int32)
    bsz, seq_len = tokens.shape
    num_emb, emb_dim = weights.shape
    max_pos = padding_idx + 1 + seq_len
    if num_emb < max_pos:
        # Same behaviour as the PyTorch forward: grow the deterministic table.
        weights = get_embedding(max_pos, emb_dim, padding_idx)
        num_emb = max_pos
    out_dtype = jnp.dtype(out_dtype)
    weights = weights.astype(out_dtype)   # bf16 table also halves the slab reads

    # Contiguous position window.  weights[padding_idx] is all zeros, so padded
    # tokens only need a mask multiply (no gather at all).
    if left_pad:
        # Per-row shift = nonpad - S.  Prepend S zero rows so every per-row
        # window start is >= 0 and the pl.ds slice always stays in bounds.
        padded = jnp.concatenate(
            [jnp.zeros((seq_len, emb_dim), out_dtype), weights], axis=0)
        slab = padded[padding_idx + 1: padding_idx + 1 + 2 * seq_len]      # (2S, D)
        starts = jnp.sum(tokens != padding_idx, axis=1, dtype=jnp.int32)   # (B,)
    else:
        slab = weights[padding_idx + 1: padding_idx + 1 + seq_len]         # (S, D)
        starts = jnp.zeros((bsz,), jnp.int32)                              # unused

    # ---- generation-aware tile & VMEM budgeting -----------------------------
    out_bytes = out_dtype.itemsize
    sub_mult = 16 if out_bytes == 2 else 8        # sublane tile for the out dtype
    row_bytes = emb_dim * out_bytes
    vmem_budget = _vmem_budget_bytes()
    fit_budget = int(vmem_budget * 0.9)
    target_out = 8 << 20                          # >= 8 MiB output tile per step

    user_tiles = (block_b is not None) or (block_s is not None)

    s_cands = _seq_tile_candidates(seq_len, sub_mult)
    if block_s is None:
        fit = [d for d in s_cands if d * row_bytes <= target_out]
        block_s = max(fit) if fit else min(s_cands)
    else:
        block_s = max(1, min(block_s, seq_len))
        while block_s > 1 and (seq_len % block_s or block_s % sub_mult):
            block_s -= 1
        if seq_len % block_s or (block_s % sub_mult and block_s != seq_len):
            block_s = seq_len

    b_cands = [d for d in range(1, bsz + 1) if bsz % d == 0]
    if block_b is None:
        want = target_out // max(block_s * row_bytes, 1)
        want = min(max(int(want), 1), bsz)
        block_b = max(d for d in b_cands if d <= want)
    else:
        block_b = max(1, min(block_b, bsz))
        while bsz % block_b:
            block_b -= 1

    # VMEM accounting: 2x output block + 2x lane-padded token block + slab
    # (worst case: left-pad slab double-buffered in the fallback path).
    slab_rows = slab.shape[0]

    def vmem_need(bb, bs):
        out_blk = 2 * bb * bs * emb_dim * out_bytes
        tok_blk = 2 * bb * bs * 128 * 4            # token lane dim padded to 128
        sl = (2 * slab_rows * emb_dim * out_bytes) if left_pad \
            else (2 * bs * emb_dim * out_bytes)
        return out_blk + tok_blk + sl

    while vmem_need(block_b, block_s) > fit_budget and block_b > 1:
        block_b = max(d for d in b_cands if d < block_b)
    while vmem_need(block_b, block_s) > fit_budget and block_s > min(s_cands):
        smaller = [d for d in s_cands if d < block_s]
        if not smaller:
            break
        block_s = max(smaller)

    # Guarantee >= 2 grid steps when possible so v7x's second TC gets work.
    if not user_tiles and (bsz // block_b) * (seq_len // block_s) < 2:
        if bsz > 1:
            block_b = max(d for d in b_cands if d < bsz)
        else:
            smaller = [d for d in s_cands if d < block_s]
            if smaller:
                block_s = max(smaller)

    # Grid: batch innermost so the (s-only) right-pad slab block index stays
    # constant across consecutive steps and Pallas skips its re-DMA.
    grid = (seq_len // block_s, bsz // block_b)

    tokens3 = tokens.reshape(bsz, seq_len, 1)

    kernel = functools.partial(_sinpos_kernel, padding_idx=padding_idx,
                               left_pad=left_pad, block_b=block_b,
                               block_s=block_s)

    tok_spec = pl.BlockSpec((block_b, block_s, 1), lambda s, b, starts: (b, s, 0))
    out_spec = pl.BlockSpec((block_b, block_s, emb_dim),
                            lambda s, b, starts: (b, s, 0))

    def run(slab_spec):
        return pl.pallas_call(
            kernel,
            out_shape=jax.ShapeDtypeStruct((bsz, seq_len, emb_dim), out_dtype),
            grid_spec=pltpu.PrefetchScalarGridSpec(
                num_scalar_prefetch=1,
                grid=grid,
                in_specs=[tok_spec, slab_spec],
                out_specs=out_spec,
            ),
            compiler_params=pltpu.CompilerParams(
                dimension_semantics=("parallel", "parallel"),
                vmem_limit_bytes=int(vmem_budget)),
        )(starts, tokens3, slab)

    if left_pad:
        resident = lambda s, b, starts: (0, 0)
        try:
            # Constant block index -> single buffer is enough; frees VMEM.
            return run(pl.BlockSpec(slab.shape, resident,
                                    pipeline_mode=pl.Buffered(1)))
        except Exception:
            # Fallback: default (double-buffered) resident slab — correct,
            # just uses more VMEM (already accounted for in the budget).
            return run(pl.BlockSpec(slab.shape, resident))
    return run(pl.BlockSpec((block_s, emb_dim), lambda s, b, starts: (s, 0)))


# TODO(synk): incremental_state / timestep decode path (single-row table read)
# and the onnx_trace branch are not kernelized; only the [bsz x seqlen] forward
# path is implemented here.


if __name__ == "__main__":
    # Small config consistent with SinusoidalPositionalEmbedding.__init__.
    embedding_dim = 128      # multiple of 128 -> lane-dense output stores
    padding_idx = 1
    init_size = 64
    bsz, seq_len = 4, 16

    weights = get_embedding(init_size, embedding_dim, padding_idx)

    key = jax.random.PRNGKey(0)
    tokens = jax.random.randint(key, (bsz, seq_len), minval=2, maxval=50,
                                dtype=jnp.int32)

    def reference(toks, w, left_pad):
        mask = toks != padding_idx
        pos = jnp.arange(padding_idx + 1, padding_idx + 1 + seq_len,
                         dtype=jnp.int32)[None, :]
        if left_pad:
            pos = pos - seq_len + jnp.sum(mask, axis=1, dtype=jnp.int32)[:, None]
        positions = jnp.where(mask, pos, padding_idx)
        return w[positions.reshape(-1)].reshape(bsz, seq_len, embedding_dim)

    # ---- right padding, explicit tiles (grid = 2 seq-tiles x 2 batch-tiles) ----
    toks_r = tokens.at[0, 13:].set(padding_idx)
    toks_r = toks_r.at[1, 10:].set(padding_idx)
    toks_r = toks_r.at[2, 15:].set(padding_idx)
    out_r = sinusoidal_positional_embedding(
        toks_r, weights, padding_idx=padding_idx, left_pad=False,
        block_b=2, block_s=8)
    out_r = jax.block_until_ready(out_r)
    ref_r = reference(toks_r, weights, False)
    assert out_r.shape == (bsz, seq_len, embedding_dim)
    assert out_r.dtype == jnp.float32
    assert jnp.allclose(out_r, ref_r, atol=1e-6), "right-pad (tiled) mismatch"

    # ---- right padding, auto tile selection (exercises the >=2-step split) ----
    out_ra = sinusoidal_positional_embedding(
        toks_r, weights, padding_idx=padding_idx, left_pad=False)
    out_ra = jax.block_until_ready(out_ra)
    assert jnp.allclose(out_ra, ref_r, atol=1e-6), "right-pad (auto) mismatch"

    # ---- left padding (per-row window via scalar prefetch), auto tiles ----
    toks_l = tokens.at[0, :3].set(padding_idx)
    toks_l = toks_l.at[1, :6].set(padding_idx)
    toks_l = toks_l.at[3, :1].set(padding_idx)
    out_l = sinusoidal_positional_embedding(
        toks_l, weights, padding_idx=padding_idx, left_pad=True)
    out_l = jax.block_until_ready(out_l)
    ref_l = reference(toks_l, weights, True)
    assert jnp.allclose(out_l, ref_l, atol=1e-6), "left-pad mismatch"

    # ---- left padding with explicit batch/seq tiling ----
    out_lt = sinusoidal_positional_embedding(
        toks_l, weights, padding_idx=padding_idx, left_pad=True,
        block_b=2, block_s=8)
    out_lt = jax.block_until_ready(out_lt)
    assert jnp.allclose(out_lt, ref_l, atol=1e-6), "tiled left-pad mismatch"

    # ---- optional bf16 output path (halves HBM writeback) ----
    out_bf = sinusoidal_positional_embedding(
        toks_r, weights, padding_idx=padding_idx, left_pad=False,
        out_dtype=jnp.bfloat16)
    out_bf = jax.block_until_ready(out_bf)
    assert out_bf.dtype == jnp.bfloat16
    assert jnp.allclose(out_bf.astype(jnp.float32), ref_r, atol=1e-2), \
        "bf16 right-pad mismatch"

    print("KERNEL_OK")
</pallas_src>

<mosaic_0001>
module attributes {stable_mosaic.version = 11 : i64} {
  func.func @_sinpos_kernel(%arg0: i32, %arg1: i32, %arg2: memref<4xi32, #tpu.memory_space<smem>>, %arg3: memref<2x8x1xi32, #tpu.memory_space<vmem>>, %arg4: memref<8x128xf32, #tpu.memory_space<vmem>>, %arg5: memref<2x8x128xf32, #tpu.memory_space<vmem>>) attributes {dimension_semantics = [#tpu.dimension_semantics<parallel>, #tpu.dimension_semantics<parallel>], iteration_bounds = array<i64: 2, 2>, scalar_prefetch = 1 : i64, scratch_operands = 0 : i64, tpu.core_type = #tpu.core_type<tc>, window_params = [{transform_indices = @transform_0, window_bounds = array<i64: 2, 8, 1>}, {transform_indices = @transform_1, window_bounds = array<i64: 8, 128>}, {transform_indices = @transform_2, window_bounds = array<i64: 2, 8, 128>}]} {
    %c0 = arith.constant 0 : index
    %c0_0 = arith.constant 0 : index
    %c0_1 = arith.constant 0 : index
    %0 = vector.load %arg3[%c0, %c0_0, %c0_1] : memref<2x8x1xi32, #tpu.memory_space<vmem>>, vector<2x8x1xi32>
    %c1_i32 = arith.constant 1 : i32
    %1 = vector.broadcast %c1_i32 : i32 to vector<2x8x1xi32>
    %2 = arith.cmpi ne, %0, %1 : vector<2x8x1xi32>
    %3 = arith.extui %2 : vector<2x8x1xi1> to vector<2x8x1xi32>
    %4 = arith.sitofp %3 : vector<2x8x1xi32> to vector<2x8x1xf32>
    %c0_2 = arith.constant 0 : index
    %c0_3 = arith.constant 0 : index
    %5 = vector.load %arg4[%c0_2, %c0_3] : memref<8x128xf32, #tpu.memory_space<vmem>>, vector<8x128xf32>
    %6 = vector.shape_cast %5 : vector<8x128xf32> to vector<1x8x128xf32>
    %7 = vector.broadcast %6 : vector<1x8x128xf32> to vector<2x8x128xf32>
    %8 = vector.broadcast %4 : vector<2x8x1xf32> to vector<2x8x128xf32>
    %9 = arith.mulf %7, %8 : vector<2x8x128xf32>
    %c0_4 = arith.constant 0 : index
    %c0_5 = arith.constant 0 : index
    %c0_6 = arith.constant 0 : index
    %10 = vector.load %arg5[%c0_4, %c0_5, %c0_6] : memref<2x8x128xf32, #tpu.memory_space<vmem>>, vector<2x8x128xf32>
    tpu.vector_store %arg5[%c0_4, %c0_5, %c0_6], %9 {strides = array<i32>} : memref<2x8x128xf32, #tpu.memory_space<vmem>>, vector<2x8x128xf32>,
    return
  }
  func.func @transform_0(%arg0: i32, %arg1: i32, %arg2: memref<4xi32, #tpu.memory_space<smem>>) -> (i32, i32, i32) {
    %c0_i32 = arith.constant 0 : i32
    %c0_i32_0 = arith.constant 0 : i32
    return %arg1, %arg0, %c0_i32 : i32, i32, i32
  }
  func.func @transform_1(%arg0: i32, %arg1: i32, %arg2: memref<4xi32, #tpu.memory_space<smem>>) -> (i32, i32) {
    %c0_i32 = arith.constant 0 : i32
    %c0_i32_0 = arith.constant 0 : i32
    return %arg0, %c0_i32 : i32, i32
  }
  func.func @transform_2(%arg0: i32, %arg1: i32, %arg2: memref<4xi32, #tpu.memory_space<smem>>) -> (i32, i32, i32) {
    %c0_i32 = arith.constant 0 : i32
    %c0_i32_0 = arith.constant 0 : i32
    return %arg1, %arg0, %c0_i32 : i32, i32, i32
  }
}

</mosaic_0001>

<bundles_post_ra>
// kernel: tpu_custom_call.1
= control target key start
LH: loop header
LB: loop body
LE: loop exit
PB: predicated region body
PF: predicated region fallthrough
CT: control target
= control target key end

     0   :  { %s758_s0 = inlined_call_operand.vmem [shape: s32[4], index: 0, kind: input, shape index: {}]   ;;  %s759_s1 = inlined_call_operand.vmem [shape: s32[4,16,1], index: 1, kind: input, shape index: {}]   ;;  %s760_s2 = inlined_call_operand.vmem [shape: f32[16,128], index: 2, kind: input, shape index: {}]   ;;  %s761_s3 = inlined_call_operand.hbm [shape: f32[4,16,128], index: 3, kind: output, shape index: {}]  }
   0x1   :  { %s8_s14 = sshll.u32 %s758_s0, 4  ;;  %s9_s14 = int_to_ptr.vmem [resolvable:$true] %s8_s14 }
   0x2   :  { %s465_s15 = scalar_lea.vmem %s9_s14, 16  ;;  %p470_p1 = scmp.lt.s32.totalorder %s9_s14, %s9_s14 }
   0x3   :  { %p466_p0 = scmp.ne.s32.totalorder %s9_s14, %s465_s15  ;;  %p471_p2 = scmp.lt.s32.totalorder %s465_s15, %s465_s15 }
   0x5   :  { %p472_p3 = por %p471_p2, %p470_p1 }
   0x7   :  { %p473_p4 = pnand %p472_p3, %p466_p0 }
   0x9   :  { %476 = shalt.err (!%p473_p4)  }
   0xa   :  { %s573_s16 = smov [#allocation3]  }
   0xb   :  { %11 = dma.vmem_to_smem %s9_s14, 16, %s573_s16, [#allocation2] }
   0xc   :  { %535 = dma.done.wait [#allocation2], 16 }
   0xd   :  { %536 = vsyncadd [#allocation2], 4294967280 }
   0xe   :  { %13 = sfence }
   0xf   :  { %14 = vsyncpa [#allocation6], 0 }
  0x10   :  { %16 = vsyncpa [#allocation6 + $0x1], 0  ;;  %s603_s17 = smov 0   ;;  %s605_s18 = smov 0  }
  0x11   :  { %s607_s0 = smov 0   ;;  %s609_s19 = smov 0  }
  0x12   :  { %s611_s20 = smov 0   ;;  %s613_s21 = smov 0  }
  0x13   :  { %s615_s22 = smov 0   ;;  %s617_s23 = smov 0  }
  0x14 LB: > { %s360_s24 = sadd.s32 4294967295, %s571_s23   ;;  %s361_s25 = sadd.s32 4294967294, %s571_s23   ;;  %s571_s23 = sphi %s617_s23, %s22_s23   ;;  %s567_s22 = sphi %s615_s22, %s771_s22   ;;  %s563_s21 = sphi %s613_s21, %s770_s21   ;;  %s559_s20 = sphi %s611_s20, %s769_s20   ;;  %s555_s19 = sphi %s609_s19, %s768_s19   ;;  %s551_s0 = sphi %s607_s0, %s767_s0   ;;  %s547_s18 = sphi %s605_s18, %s766_s18   ;;  %s543_s17 = sphi %s603_s17, %s765_s17  }
  0x15   : > { %s31_s26 = sadd.s32 1, %s563_s21  ;;  %s34_s27 = sadd.s32 1, %s567_s22 }
  0x16   : > { %p32_p5 = scmp.ge.s32.totalorder %s31_s26, 2  ;;  %p50_p6 = scmp.ne.s32.totalorder %s551_s0, %s547_s18 }
  0x17   : > { %p51_p7 = scmp.eq.s32.totalorder %s571_s23, 0  ;;  %p108_p10 = scmp.eq.s32.totalorder %s360_s24, 3 }
  0x18   : > { %s773_s26 = smov (%p32_p5, %s31_s26), 0  ;;  %s775_s27 = smov (!%p32_p5, %s34_s27), %s567_s22 }
  0x19   : > { %s38_s28 = ssub.s32 %s563_s21, %s773_s26  ;;  %p655_p8 = por %p51_p7, %p50_p6 }
  0x1a   : > { %p36_p9 = scmp.ge.s32.totalorder %s775_s27, 2  ;;  %p113_p11 = scmp.ne.s32.totalorder %s547_s18, %s543_s17 }
  0x1b   : > { %p114_p12 = scmp.eq.s32.totalorder %s361_s25, 3  ;;  %p663_p13 = por %p108_p10, %p50_p6 }
  0x1c   : > { %s777_s27 = smov (%p36_p9, %s775_s27), 0  ;;  %s43_s7 = sadd.s32 1, %s551_s0 }
  0x1d   : > { %p667_p0 = por %p114_p12, %p113_p11  ;;  %s39_s5 = ssub.s32 %s567_s22, %s777_s27 }
  0x1e   : > { %s40_s6 = sor.u32 %s39_s5, %s38_s28  ;;  %p363_p2 = scmp.ge.s32.totalorder %s571_s23, 4 }
  0x1f   : > { %p41_p1 = scmp.eq.s32.totalorder %s40_s6, 0 }
  0x20   : > { %130 = sbr.rel (%p363_p2) target bundleno = 44 (0x2c), region = 16 }
  0x21   : > { %s675_s8 = scalar_select %p41_p1, %s551_s0, %s43_s7  }
  0x25   : > { %133 = sbr.rel (!%p655_p8) target bundleno = 44 (0x2c), region = 20  ;;  %s135_s9 = sand.u32 (%p655_p8), 1, %s551_s0  }
  0x26   : > { %s380_s10 = sshll.u32 (%p655_p8), %s563_s21, 2  ;;  %s364_s11 = sshll.u32 (%p655_p8), %s135_s9, 4 }
  0x27   : > { %s140_s12 = sadd.s32 (%p655_p8), %s567_s22, %s380_s10  ;;  %s137_s24 = scalar_lea.vmem (%p655_p8), [#allocation4], %s364_s11 }
  0x28   : > { %s367_s13 = sshll.u32 (%p655_p8), %s140_s12, 3 }
  0x29   : > { %s142_s16 = scalar_lea.vmem (%p655_p8), %s759_s1, %s367_s13 }
  0x2a   : > { %v173_v0 = vld [vmem:[%s142_s16] sm:$0xff]  ;;  %v175_v1 = vld [vmem:[%s142_s16 + $0x10] sm:$0xff] }
  0x2b   : > { %174 = vst [vmem:[%s137_s24] sm:$0xff] %v173_v0  ;;  %176 = vst [vmem:[%s137_s24 + $0x8] sm:$0xff] %v175_v1 }
  0x2c PF: > { %p368_p3 = scmp.ge.s32.totalorder %s571_s23, 1  ;;  %p188_p4 = scmp.lt.s32.totalorder %s571_s23, 5 }
  0x2e   : > { %p189_p5 = pnand %p368_p3, %p188_p4 }
  0x2f   : > { %s195_s25 = sand.u32 (!%p189_p5), 1, %s547_s18   ;;  %p221_p6 = scmp.lt.s32.totalorder (!%p189_p5), %s559_s20, 1 }
  0x30   : > { %192 = sbr.rel (%p189_p5) target bundleno = 201 (0xc9), region = 62  ;;  %s369_s28 = sshll.u32 (!%p189_p5), %s195_s25, 4 }
  0x31   : > { %s197_s29 = scalar_lea.vmem (!%p189_p5), [#allocation4], %s369_s28  ;;  %s381_s6 = sshll.u32 (!%p189_p5), %s555_s19, 2 }
  0x32   : > { %s262_s9 = sadd.s32 (!%p189_p5), %s559_s20, %s381_s6  ;;  %s219_s13 = scalar_lea.vmem (!%p189_p5), [#allocation5], %s369_s28 }
  0x33   : > { %s265_s14 = sshll.u32 (!%p189_p5), %s219_s13, 4  ;;  %s377_s15 = sshll.u32 (!%p189_p5), %s262_s9, 7  ;;  %s698_s14 = int_to_ptr.vmem [resolvable:$true] %s265_s14 }
  0x34   : > { %s707_s24 = scalar_lea.sflag (!%p189_p5), [#allocation6], %s195_s25  ;;  %s477_s28 = scalar_lea.vmem (!%p189_p5), %s698_s14, 256 }
  0x35   : > { %v574_v2 = vmov 0   ;;  %v226_v3 = vld [vmem:[%s197_s29] sm:$0xff]  ;;  %v227_v4 = vld [vmem:[%s197_s29 + $0x8] sm:$0xff]  ;;  %v575_v5 = vmov 0.0   ;;  %s222_s5 = scalar_select %p221_p6, %s559_s20, 1 }
  0x36   : > { %459 = vset.pattern.permute.xlu0 %v574_v2  ;;  %vm228_vm0 = vcmp.ne.s32.totalorder %v226_v3, 1  ;;  %vm229_vm1 = vcmp.ne.s32.totalorder %v227_v4, 1  ;;  %s703_s20 = scalar_lea.hbm %s761_s3, %s377_s15  ;;  %p478_p7 = scmp.ne.s32.totalorder %s698_s14, %s477_s28 }
  0x37   : > { %v372_v6 = vsel %vm228_vm0, 1.0, %v575_v5  ;;  %v373_v7 = vsel %vm229_vm1, 1.0, %v575_v5  ;;  %s371_s7 = sshll.u32 %s222_s5, 3  ;;  %s576_s29 = smov [#allocation5]  }
  0x38   : > { %v460_v8 = vpack.i.bf16 %v373_v7, %v372_v6  ;;  %s224_s12 = scalar_lea.vmem %s760_s2, %s371_s7  ;;  %p479_p8 = pnand %p478_p7, %p663_p13 }
  0x39   : > { %v234_v9 = vld [vmem:[%s224_s12] sm:$0xff]  ;;  %s481_s5 = sshll.u32 %s576_s29, 4  ;;  %s482_s5 = int_to_ptr.vmem [resolvable:$false] %s481_s5 }
  0x3a   : > { %461 = vperm.xlu0 %459, %v460_v8   ;;  %p480_p9 = pneg %p479_p8  ;;  %s483_s6 = scalar_lea.vmem %s482_s5, 512 }
  0x3b   : > { %p484_p10 = scmp.lt.s32.totalorder %s698_s14, %s482_s5  ;;  %p485_p11 = scmp.lt.s32.totalorder %s483_s6, %s477_s28 }
  0x3d   : > { %p486_p12 = por %p485_p11, %p484_p10 }
  0x3f   : > { %p487_p1 = pnand %p486_p12, %p480_p9 }
  0xb5   : > { %v462_v10 = vpop.permute.xlu0 %461 }
  0xb6   : > { %v464_v11 = vunpack.i.h.bf16 %v462_v10  ;;  %v463_v12 = vunpack.i.l.bf16 %v462_v10 }
  0xb8   : > { %v246_v13 = vmul.f32 %v464_v11, %v234_v9  ;;  %v245_v14 = vmul.f32 %v463_v12, %v234_v9 }
  0xba   : > { %248 = vst [vmem:[%s219_s13 + $0x8] sm:$0xff] %v246_v13  ;;  %247 = vst [vmem:[%s219_s13] sm:$0xff] %v245_v14 }
  0xbb   : > { %490 = shalt.err (!%p487_p1)
}
  0xbc   : > { %s491_s25 = scalar_lea.hbm %s703_s20, 256  ;;  %s495_s10 = scalar_lea.hbm %s761_s3, 1024 }
  0xbd   : > { %p492_p2 = scmp.ne.s32.totalorder %s703_s20, %s491_s25  ;;  %p496_p5 = scmp.lt.s32.totalorder %s703_s20, %s761_s3 }
  0xbe   : > { %p497_p6 = scmp.lt.s32.totalorder %s495_s10, %s491_s25 }
  0xbf   : > { %p493_p3 = pnand %p492_p2, %p663_p13 }
  0xc0   : > { %p498_p7 = por %p497_p6, %p496_p5 }
  0xc1   : > { %p494_p4 = pneg %p493_p3 }
  0xc3   : > { %p499_p8 = pnand %p498_p7, %p494_p4 }
  0xc5   : > { %502 = shalt.err (!%p499_p8)
}
  0xc6   : > { %s577_s13 = smov 128   ;;  %s578_s15 = smov 256  }
  0xc7   : > { %s579_s19 = smov 8  }
  0xc8   : > { %382 = dma.vmem_to_hbm [thread:$0]  (%p663_p13), %s698_s14, 256, %s703_s20, %s707_s24, %s577_s13, %s578_s15, %s579_s19  }
  0xc9 PF: > { %p388_p9 = scmp.ge.s32.totalorder %s571_s23, 2  ;;  %s280_s16 = sand.u32 1, %s543_s17  }
  0xca   : > { %s281_s28 = scalar_lea.sflag [#allocation6], %s280_s16 }
  0xcb   : > { %p385_p10 = pnand %p388_p9, %p667_p0 }
  0xcd   : > { %p386_p11 = pneg %p385_p10 }
  0xcf   : > { %538 = dma.done.wait (%p386_p11), %s281_s28, 256  }
  0xd0   : > { %540 = vsyncadd (%p386_p11), %s281_s28, 4294967040  ;;  %s22_s23 = sadd.s32 1, %s571_s23   ;;  %s765_s17 = smov %s547_s18 }
  0xd1   : > { %p19_p12 = scmp.ge.s32.totalorder %s22_s23, 6   ;;  %s766_s18 = smov %s551_s0 }
  0xd2   : > { %s767_s0 = smov %s675_s8  ;;  %s768_s19 = smov %s563_s21 }
  0xd3   : > { %s769_s20 = smov %s567_s22  ;;  %s770_s21 = smov %s773_s26 }
  0xd4   : > { %s771_s22 = smov %s777_s27  ;;  %21 = sbr.rel (!%p19_p12) target bundleno = 20 (0x14), region = 109 }
  0xd9   :  { %286 = vsyncpa [#allocation6], 1 }
  0xda   :  { %288 = vsyncpa [#allocation6 + $0x1], 1 }

</bundles_post_ra>
